<compile_context>
chip_gen: v5e
topology: v5e:2x2
jax: 0.10.0
libtpu: 0.0.40
codegen_flags: <defaults>
</compile_context>

<pallas_src>
import jax
import jax.numpy as jnp
from jax.experimental import pallas as pl
from jax.experimental.pallas import tpu as pltpu

_LANES = 128
_SUBLANES = 8


def _round_up(x, m):
    return ((x + m - 1) // m) * m


def _orthogonal_init(key, d_out, d_in):
    """Semi-orthogonal (d_out, d_in) matrix, gain 1, like torch orthogonal_."""
    n, m = max(d_out, d_in), min(d_out, d_in)
    a = jax.random.normal(key, (n, m), dtype=jnp.float32)
    q, r = jnp.linalg.qr(a)
    d = jnp.diagonal(r)
    q = q * jnp.where(d >= 0.0, 1.0, -1.0)  # fix signs for a proper Haar draw
    if d_out < d_in:
        q = q.T
    return q  # (d_out, d_in), orthonormal rows or columns


def _make_fused_mlp_kernel(n_layers, dims_pad, compute_dtype):
    """Kernel: refs = (x, w_0..w_{n-1}, bias_packed, out)."""
    out_pads = dims_pad[1:]

    def kernel(*refs):
        x_ref = refs[0]
        w_refs = refs[1:1 + n_layers]
        b_ref = refs[1 + n_layers]
        o_ref = refs[2 + n_layers]

        biases = b_ref[...]            # (8k, D_max_pad) f32, loaded once
        h = x_ref[...]                 # (TM, D0_pad) f32
        for l in range(n_layers):      # unrolled over layers
            acc = jnp.dot(h.astype(compute_dtype), w_refs[l][...],
                          preferred_element_type=jnp.float32)      # MXU, f32 acc
            acc = acc + biases[l:l + 1, :out_pads[l]]               # f32 epilogue
            h = jnp.maximum(acc, 0.0)                               # ReLU (VPU)
        o_ref[...] = h.astype(o_ref.dtype)

    return kernel


def fused_mlp_forward(x, w_padded, bias_packed, dims_pad, feature_dim,
                      compute_dtype, block_rows=256):
    """y = relu(...relu(x @ W0 + b0)... @ Wn + bn), single pallas_call."""
    B, d_in = x.shape
    n_layers = len(w_padded)
    d0_pad, d_last_pad = dims_pad[0], dims_pad[-1]

    # Batch tile: multiple of 8 sublanes, up to `block_rows` rows per grid step.
    tm = min(block_rows, _round_up(B, _SUBLANES))
    b_pad = _round_up(B, tm)

    # Lane-dense, zero-padded input slab.
    xp = jnp.zeros((b_pad, d0_pad), x.dtype)
    xp = xp.at[:B, :d_in].set(x)

    in_specs = [pl.BlockSpec((tm, d0_pad), lambda i: (i, 0))]       # batch-tiled
    for l in range(n_layers):
        di, do = dims_pad[l], dims_pad[l + 1]
        in_specs.append(pl.BlockSpec((di, do), lambda i: (0, 0)))   # VMEM-resident
    in_specs.append(pl.BlockSpec(bias_packed.shape, lambda i: (0, 0)))

    out = pl.pallas_call(
        _make_fused_mlp_kernel(n_layers, dims_pad, compute_dtype),
        out_shape=jax.ShapeDtypeStruct((b_pad, d_last_pad), x.dtype),
        grid_spec=pl.GridSpec(
            grid=(b_pad // tm,),
            in_specs=in_specs,
            out_specs=pl.BlockSpec((tm, d_last_pad), lambda i: (i, 0)),
        ),
        # Batch axis is embarrassingly parallel -> megacore sharding on v7x.
        # NOTE: for very wide hidden_units (>= 2048) set vmem_limit_bytes and
        # shrink the weight K-tile to fit v7x's 64 MiB VMEM.
        compiler_params=pltpu.CompilerParams(
            dimension_semantics=("parallel",)),
    )(xp, *w_padded, bias_packed)

    return out[:B, :feature_dim]


class FCBody:
    """JAX/Pallas port of PyTorch FCBody (gate=relu, noisy_linear=False)."""
    # TODO(synk): NoisyLinear / reset_noise path not implemented (noisy_linear=False only).

    def __init__(self, state_dim, hidden_units=(64, 64), key=None,
                 compute_dtype=jnp.bfloat16, block_rows=256):
        dims = (state_dim,) + tuple(hidden_units)
        self.dims = dims
        self.feature_dim = dims[-1]
        self.compute_dtype = compute_dtype
        self.block_rows = block_rows
        self.dims_pad = tuple(_round_up(d, _LANES) for d in dims)

        if key is None:
            key = jax.random.PRNGKey(0)

        # f32 master params (orthogonal init, zero bias, like layer_init).
        self.weights_t = []   # (d_in, d_out) f32
        self.biases = []      # (d_out,)      f32
        for d_in, d_out in zip(dims[:-1], dims[1:]):
            key, wk = jax.random.split(key)
            w = _orthogonal_init(wk, d_out, d_in)          # (d_out, d_in)
            self.weights_t.append(jnp.transpose(w).astype(jnp.float32))
            self.biases.append(jnp.zeros((d_out,), jnp.float32))

        # Kernel-side params: zero-padded to 128-lane multiples, bf16 weights.
        self.w_padded = []
        for l, w_t in enumerate(self.weights_t):
            di, do = self.dims_pad[l], self.dims_pad[l + 1]
            wp = jnp.zeros((di, do), compute_dtype)
            wp = wp.at[:w_t.shape[0], :w_t.shape[1]].set(w_t.astype(compute_dtype))
            self.w_padded.append(wp)

        n_layers = len(self.weights_t)
        d_max = max(self.dims_pad[1:])
        bp = jnp.zeros((_round_up(n_layers, _SUBLANES), d_max), jnp.float32)
        for l, b in enumerate(self.biases):
            bp = bp.at[l, :b.shape[0]].set(b)
        self.bias_packed = bp

    def __call__(self, x):
        return fused_mlp_forward(x, tuple(self.w_padded), self.bias_packed,
                                 self.dims_pad, self.feature_dim,
                                 self.compute_dtype, self.block_rows)


if __name__ == "__main__":
    key = jax.random.PRNGKey(0)
    k_x, k_p = jax.random.split(key)

    batch, state_dim = 8, 32
    hidden_units = (64, 64)

    x = jax.random.normal(k_x, (batch, state_dim), dtype=jnp.float32)

    body = FCBody(state_dim, hidden_units=hidden_units, key=k_p)
    out = jax.block_until_ready(body(x))

    # Reference: same math in plain JAX (bf16 MXU inputs, f32 accumulate,
    # f32 bias + ReLU) so the comparison matches the kernel's numerics.
    ref = x
    for w_t, b in zip(body.weights_t, body.biases):
        acc = jnp.dot(ref.astype(body.compute_dtype),
                      w_t.astype(body.compute_dtype),
                      preferred_element_type=jnp.float32)
        ref = jnp.maximum(acc + b, 0.0)

    assert out.shape == (batch, body.feature_dim)
    assert jnp.allclose(out, ref, atol=2e-2, rtol=2e-2), \
        float(jnp.max(jnp.abs(out - ref)))

    print("KERNEL_OK")
</pallas_src>

<mosaic_0001>
module attributes {stable_mosaic.version = 11 : i64} {
  func.func @kernel(%arg0: i32, %arg1: memref<8x128xf32, #tpu.memory_space<vmem>>, %arg2: memref<128x128xbf16, #tpu.memory_space<vmem>>, %arg3: memref<128x128xbf16, #tpu.memory_space<vmem>>, %arg4: memref<8x128xf32, #tpu.memory_space<vmem>>, %arg5: memref<8x128xf32, #tpu.memory_space<vmem>>) attributes {dimension_semantics = [#tpu.dimension_semantics<parallel>], iteration_bounds = array<i64: 1>, scalar_prefetch = 0 : i64, scratch_operands = 0 : i64, tpu.core_type = #tpu.core_type<tc>, window_params = [{transform_indices = @transform_0, window_bounds = array<i64: 8, 128>}, {pipeline_mode = #tpu.pipeline_mode<synchronous>, transform_indices = @transform_1, window_bounds = array<i64: 128, 128>}, {pipeline_mode = #tpu.pipeline_mode<synchronous>, transform_indices = @transform_2, window_bounds = array<i64: 128, 128>}, {pipeline_mode = #tpu.pipeline_mode<synchronous>, transform_indices = @transform_3, window_bounds = array<i64: 8, 128>}, {transform_indices = @transform_4, window_bounds = array<i64: 8, 128>}]} {
    %c0 = arith.constant 0 : index
    %c0_0 = arith.constant 0 : index
    %0 = vector.load %arg4[%c0, %c0_0] : memref<8x128xf32, #tpu.memory_space<vmem>>, vector<8x128xf32>
    %c0_1 = arith.constant 0 : index
    %c0_2 = arith.constant 0 : index
    %1 = vector.load %arg1[%c0_1, %c0_2] : memref<8x128xf32, #tpu.memory_space<vmem>>, vector<8x128xf32>
    %2 = arith.truncf %1 : vector<8x128xf32> to vector<8x128xbf16>
    %c0_3 = arith.constant 0 : index
    %c0_4 = arith.constant 0 : index
    %3 = vector.load %arg2[%c0_3, %c0_4] : memref<128x128xbf16, #tpu.memory_space<vmem>>, vector<128x128xbf16>
    %cst = arith.constant dense<0.000000e+00> : vector<8x128xf32>
    %4 = tpu.matmul %2, %3, %cst {dimension_numbers = #tpu.dot_dimension_numbers<[1], [0], [0], [1], [0, 0, 1, 1], [], []>} : vector<8x128xbf16>, vector<128x128xbf16>, vector<8x128xf32> -> vector<8x128xf32>
    %5 = vector.extract_strided_slice %0 {offsets = [0, 0], sizes = [1, 128], strides = [1, 1]} : vector<8x128xf32> to vector<1x128xf32>
    %6 = vector.broadcast %5 : vector<1x128xf32> to vector<8x128xf32>
    %7 = arith.addf %4, %6 : vector<8x128xf32>
    %cst_5 = arith.constant 0.000000e+00 : f32
    %8 = vector.broadcast %cst_5 : f32 to vector<8x128xf32>
    %9 = arith.maximumf %7, %8 : vector<8x128xf32>
    %10 = arith.truncf %9 : vector<8x128xf32> to vector<8x128xbf16>
    %c0_6 = arith.constant 0 : index
    %c0_7 = arith.constant 0 : index
    %11 = vector.load %arg3[%c0_6, %c0_7] : memref<128x128xbf16, #tpu.memory_space<vmem>>, vector<128x128xbf16>
    %cst_8 = arith.constant dense<0.000000e+00> : vector<8x128xf32>
    %12 = tpu.matmul %10, %11, %cst_8 {dimension_numbers = #tpu.dot_dimension_numbers<[1], [0], [0], [1], [0, 0, 1, 1], [], []>} : vector<8x128xbf16>, vector<128x128xbf16>, vector<8x128xf32> -> vector<8x128xf32>
    %13 = vector.extract_strided_slice %0 {offsets = [1, 0], sizes = [1, 128], strides = [1, 1]} : vector<8x128xf32> to vector<1x128xf32>
    %14 = vector.broadcast %13 : vector<1x128xf32> to vector<8x128xf32>
    %15 = arith.addf %12, %14 : vector<8x128xf32>
    %cst_9 = arith.constant 0.000000e+00 : f32
    %16 = vector.broadcast %cst_9 : f32 to vector<8x128xf32>
    %17 = arith.maximumf %15, %16 : vector<8x128xf32>
    %c0_10 = arith.constant 0 : index
    %c0_11 = arith.constant 0 : index
    %18 = vector.load %arg5[%c0_10, %c0_11] : memref<8x128xf32, #tpu.memory_space<vmem>>, vector<8x128xf32>
    tpu.vector_store %arg5[%c0_10, %c0_11], %17 {strides = array<i32>} : memref<8x128xf32, #tpu.memory_space<vmem>>, vector<8x128xf32>,
    return
  }
  func.func @transform_0(%arg0: i32) -> (i32, i32) {
    %c0_i32 = arith.constant 0 : i32
    %c0_i32_0 = arith.constant 0 : i32
    return %arg0, %c0_i32 : i32, i32
  }
  func.func @transform_1(%arg0: i32) -> (i32, i32) {
    %c0_i32 = arith.constant 0 : i32
    %c0_i32_0 = arith.constant 0 : i32
    %c0_i32_1 = arith.constant 0 : i32
    return %c0_i32, %c0_i32_0 : i32, i32
  }
  func.func @transform_2(%arg0: i32) -> (i32, i32) {
    %c0_i32 = arith.constant 0 : i32
    %c0_i32_0 = arith.constant 0 : i32
    %c0_i32_1 = arith.constant 0 : i32
    return %c0_i32, %c0_i32_0 : i32, i32
  }
  func.func @transform_3(%arg0: i32) -> (i32, i32) {
    %c0_i32 = arith.constant 0 : i32
    %c0_i32_0 = arith.constant 0 : i32
    %c0_i32_1 = arith.constant 0 : i32
    return %c0_i32, %c0_i32_0 : i32, i32
  }
  func.func @transform_4(%arg0: i32) -> (i32, i32) {
    %c0_i32 = arith.constant 0 : i32
    %c0_i32_0 = arith.constant 0 : i32
    return %arg0, %c0_i32 : i32, i32
  }
}

</mosaic_0001>

<bundles_post_ra>
// kernel: tpu_custom_call.1
= control target key start
LH: loop header
LB: loop body
LE: loop exit
PB: predicated region body
PF: predicated region fallthrough
CT: control target
= control target key end

     0   :  { %9 = vsyncpa [#allocation3], 0  ;;  %s521_s0 = inlined_call_operand.hbm [shape: f32[8,128], index: 0, kind: input, shape index: {}]   ;;  %s522_s1 = inlined_call_operand.hbm [shape: bf16[128,128], index: 1, kind: input, shape index: {}]   ;;  %s523_s2 = inlined_call_operand.hbm [shape: bf16[128,128], index: 2, kind: input, shape index: {}]   ;;  %s524_s3 = inlined_call_operand.hbm [shape: f32[8,128], index: 3, kind: input, shape index: {}]   ;;  %s525_s4 = inlined_call_operand.hbm [shape: f32[8,128], index: 4, kind: output, shape index: {}]  }
   0x1   :  { %10 = vsyncpa [#allocation6], 0 }
   0x2   :  { %11 = vsyncpa [#allocation9], 0  ;;  %s28_s17 = sshll.u32 %s522_s1, 4  ;;  %s29_s17 = int_to_ptr.hbm [resolvable:$true] %s28_s17 }
   0x3   :  { %12 = vsyncpa [#allocation4], 0  ;;  %s474_s18 = smov [#allocation5]   ;;  %s18_s22 = sshll.u32 %s521_s0, 4  ;;  %s19_s22 = int_to_ptr.hbm [resolvable:$true] %s18_s22 }
   0x4   :  { %s30_s19 = sshll.u32 %s474_s18, 4  ;;  %s475_s23 = smov 64   ;;  %s31_s19 = int_to_ptr.vmem [resolvable:$true] %s30_s19 }
   0x5   :  { %s476_s24 = smov 4   ;;  %s477_s25 = smov [#allocation2]  }
   0x6   :  { %36 = dma.hbm_to_vmem [thread:$0]  %s29_s17, 1024, %s31_s19, [#allocation6], %s475_s23, %s475_s23, %s476_s24  }
   0x7   :  { %s20_s26 = sshll.u32 %s477_s25, 4  ;;  %s41_s29 = sshll.u32 %s523_s2, 4  ;;  %s21_s26 = int_to_ptr.vmem [resolvable:$true] %s20_s26  ;;  %s42_s29 = int_to_ptr.hbm [resolvable:$true] %s41_s29 }
   0x8   :  { %23 = dma.hbm_to_vmem [thread:$0]  %s19_s22, 128, %s21_s26, [#allocation3]  }
   0x9   :  { %s55_s5 = sshll.u32 %s524_s3, 4  ;;  %s478_s6 = smov [#allocation7]   ;;  %s56_s5 = int_to_ptr.hbm [resolvable:$true] %s55_s5 }
   0xa   :  { %s43_s7 = sshll.u32 %s478_s6, 4  ;;  %s479_s0 = smov [#allocation8]   ;;  %s44_s7 = int_to_ptr.vmem [resolvable:$true] %s43_s7 }
   0xb   :  { %49 = dma.hbm_to_vmem [thread:$0]  %s42_s29, 1024, %s44_s7, [#allocation6], %s475_s23, %s475_s23, %s476_s24  }
   0xc   :  { %s57_s8 = sshll.u32 %s479_s0, 4  ;;  %s58_s8 = int_to_ptr.vmem [resolvable:$true] %s57_s8 }
   0xd   :  { %60 = dma.hbm_to_vmem [thread:$0]  %s56_s5, 128, %s58_s8, [#allocation9]  }
   0xe   :  { %466 = dma.done.wait [#allocation3], 128  }
   0xf   :  { %467 = vsyncadd [#allocation3], 4294967168 }
  0x10   :  { %468 = dma.done.wait [#allocation6], 2048  }
  0x11   :  { %469 = vsyncadd [#allocation6], 4294965248 }
  0x12   :  { %470 = dma.done.wait [#allocation9], 128  }
  0x13   :  { %471 = vsyncadd [#allocation9], 4294967168  ;;  %v330_v0 = vld [vmem:[#allocation5 + $0x38] sm:$0xff]  ;;  %v329_v1 = vld [vmem:[#allocation5 + $0x30] sm:$0xff]  ;;  %s480_s2 = smov [#allocation10]   ;;  %s247_s11 = sshll.u32 %s525_s4, 4  ;;  %s248_s11 = int_to_ptr.hbm [resolvable:$true] %s247_s11 }
  0x14   :  { %145 = vmatpush.bf16.msra.mxu0 %v330_v0  ;;  %v338_v2 = vld [vmem:[#allocation7 + $0x38] sm:$0xff]  ;;  %v337_v3 = vld [vmem:[#allocation7 + $0x30] sm:$0xff]  ;;  %v328_v4 = vld [vmem:[#allocation5 + $0x28] sm:$0xff]  ;;  %s245_s3 = sshll.u32 %s480_s2, 4  ;;  %s246_s3 = int_to_ptr.vmem [resolvable:$true] %s245_s3 }
  0x15   :  { %225 = vmatpush.bf16.msra.mxu1 %v338_v2  ;;  %v336_v5 = vld [vmem:[#allocation7 + $0x28] sm:$0xff]  ;;  %v327_v6 = vld [vmem:[#allocation5 + $0x20] sm:$0xff]  ;;  %v326_v8 = vld [vmem:[#allocation5 + $0x18] sm:$0xff] }
  0x16   :  { %v335_v7 = vld [vmem:[#allocation7 + $0x20] sm:$0xff]  ;;  %v334_v9 = vld [vmem:[#allocation7 + $0x18] sm:$0xff]  ;;  %v325_v10 = vld [vmem:[#allocation5 + $0x10] sm:$0xff] }
  0x17   :  { %v333_v11 = vld [vmem:[#allocation7 + $0x10] sm:$0xff]  ;;  %v324_v12 = vld [vmem:[#allocation5 + $0x8] sm:$0xff]  ;;  %v323_v13 = vld [vmem:[#allocation5] sm:$0xff] }
  0x18   :  { %146 = vmatpush.bf16.msra.mxu0 %v329_v1  ;;  %v78_v14 = vld [vmem:[#allocation2] sm:$0xff]  ;;  %v332_v16 = vld [vmem:[#allocation7 + $0x8] sm:$0xff]  ;;  %v331_v17 = vld [vmem:[#allocation7] sm:$0xff] }
  0x19   :  { %226 = vmatpush.bf16.msra.mxu1 %v337_v3  ;;  %v79_v15 = vpack.c.bf16 %v78_v14, %v78_v14  ;;  %v77_v18 = vld [vmem:[#allocation8] sm:$0xff] }
  0x1a   :  { %v96_v19 = vperm.slane %v77_v18, 0  ;;  %v176_v25 = vperm.slane %v77_v18, 1 }
  0x1c   :  { %147 = vmatpush.bf16.msra.mxu0 %v328_v4 }
  0x1d   :  { %227 = vmatpush.bf16.msra.mxu1 %v336_v5 }
  0x20   :  { %148 = vmatpush.bf16.msra.mxu0 %v327_v6 }
  0x21   :  { %228 = vmatpush.bf16.msra.mxu1 %v335_v7 }
  0x24   :  { %149 = vmatpush.bf16.msra.mxu0 %v326_v8 }
  0x25   :  { %229 = vmatpush.bf16.msra.mxu1 %v334_v9 }
  0x28   :  { %150 = vmatpush.bf16.msra.mxu0 %v325_v10 }
  0x29   :  { %230 = vmatpush.bf16.msra.mxu1 %v333_v11 }
  0x2c   :  { %151 = vmatpush.bf16.msra.mxu0 %v324_v12 }
  0x2d   :  { %231 = vmatpush.bf16.msra.mxu1 %v332_v16 }
  0x30   :  { %152 = vmatpush.bf16.msra.mxu0 %v323_v13 }
  0x31   :  { %232 = vmatpush.bf16.msra.mxu1 %v331_v17 }
  0x33   :  { %153 = vmatmul.bf16.vlgmr.msra.gmra.mxu0 %v79_v15 }
  0xb0   :  { %v154_v20 = vpop.f32.mrf.mxu0 }
  0xb1   :  { %v155_v21 = vadd.f32 %v154_v20, %v96_v19 }
  0xb3   :  { %v158_v22 = vmax.f32 %v155_v21, 0.0 }
  0xb5   :  { %v159_v23 = vpack.c.bf16 %v158_v22, %v158_v22 }
  0xb7   :  { %233 = vmatmul.bf16.vlgmr.msra.gmra.mxu1 %v159_v23 }
  0xb8   :  { %v156_v24 = vpop.f32.mrf.mxu0 }
 0x134   :  { %v234_v26 = vpop.f32.mrf.mxu1 }
 0x135   :  { %v235_v27 = vadd.f32 %v234_v26, %v176_v25 }
 0x137   :  { %v238_v28 = vmax.f32 %v235_v27, 0.0 }
 0x139   :  { %239 = vst [vmem:[#allocation10] sm:$0xff] %v238_v28 }
 0x13a   :  { %250 = dma.vmem_to_hbm [thread:$0]  %s246_s3, 128, %s248_s11, [#allocation4]  }
 0x13c   :  { %v236_v29 = vpop.f32.mrf.mxu1 }
 0x13d   :  { %472 = dma.done.wait [#allocation4], 128  }
 0x13e   :  { %473 = vsyncadd [#allocation4], 4294967168 }
 0x13f   :  { %255 = vsyncpa [#allocation3], 1 }
 0x140   :  { %256 = vsyncpa [#allocation6], 1 }
 0x141   :  { %257 = vsyncpa [#allocation9], 1 }
 0x142   :  { %258 = vsyncpa [#allocation4], 1 }

</bundles_post_ra>
